<compile_context>
chip_gen: v7x
topology: tpu7x:2x2x1
jax: 0.10.0
libtpu: 0.0.40
codegen_flags: <defaults>
</compile_context>

<pallas_src>
import functools

import jax
import jax.numpy as jnp
from jax import lax
from jax.experimental import pallas as pl
from jax.experimental.pallas import tpu as pltpu

LANE = 128
F_IN = 13
HID = 64


def mlp_kernel(x_ref, w1_ref, b1_ref, w2_ref, b2_ref, w3_ref, b3_ref, o_ref):
    # x_ref: (TILE_B, 13) natural-layout block of the input.
    x = x_ref[...]

    # Layer 1 [MXU]: contract w1 (64,13) dim 1 with x (TILE_B,13) dim 1 -> (64, TILE_B).
    # Result is feature-major: batch on the 128-wide lane axis from here on.
    h1 = lax.dot_general(
        w1_ref[...], x, (((1,), (1,)), ((), ())), preferred_element_type=jnp.float32
    )
    h1 = jnp.maximum(h1 + b1_ref[...], 0.0)

    # Layer 2 [MXU]: (64,64) @ (64,TILE_B) -> (64, TILE_B).
    h2 = jnp.dot(w2_ref[...], h1, preferred_element_type=jnp.float32)
    h2 = jnp.maximum(h2 + b2_ref[...], 0.0)

    # Layer 3 head [MXU, M=1]: (1,64) @ (64,TILE_B) -> (1, TILE_B). The MXU slot is
    # nearly idle here, so this is cheaper than a VALU multiply + XLU sublane reduce.
    out = jnp.dot(w3_ref[...], h2, preferred_element_type=jnp.float32) + b3_ref[...]
    o_ref[...] = out.astype(o_ref.dtype)


@functools.partial(jax.jit, static_argnames=("max_tile_b",))
def reference_regression(x, params, *, max_tile_b=4096):
    """x: (B, 13) float32; params in PyTorch nn.Linear layout. Returns (B, 1) float32."""
    w1, b1, w2, b2, w3, b3 = params  # (64,13),(64,),(64,64),(64,),(1,64),(1,)
    B, F = x.shape
    assert F == F_IN

    # --- Batch tile selection ---------------------------------------------------
    # Target large, lane-aligned tiles; keep >= 2 grid steps whenever possible so the
    # "parallel" axis can be sharded across v7x's two TensorCores; balance the tiles so
    # padding waste in the (masked) last block stays a small fraction of B.
    max_tile_b = max(LANE, (int(max_tile_b) // LANE) * LANE)
    b_round = pl.cdiv(B, LANE) * LANE
    min_tiles = 2 if b_round >= 2 * LANE else 1
    n_tiles = max(min_tiles, pl.cdiv(b_round, max_tile_b))
    tile_b = pl.cdiv(pl.cdiv(b_round, n_tiles), LANE) * LANE
    n_tiles = pl.cdiv(B, tile_b)

    # Biases as columns so they broadcast over the lane (batch) axis.
    b1c = b1.reshape(HID, 1)
    b2c = b2.reshape(HID, 1)
    b3c = b3.reshape(1, 1)

    const = lambda shape: pl.BlockSpec(shape, lambda i: (0,) * len(shape))

    # --- VMEM budget (re-derived from tile_b; capped for v7x's 64 MiB physical) ---
    # x double-buffers lane-pad 13 -> 128; out double-buffers sublane-pad 1 -> 8;
    # h1/h2 intermediates (64, tile_b) plus compiler temps; tiny resident weights.
    vmem_need = 4 * (2 * tile_b * LANE + 2 * 8 * tile_b + 4 * HID * tile_b) + (1 << 20)
    vmem_limit = int(min(max(2 * vmem_need, 16 << 20), 48 << 20))

    weight_bytes = 4 * (HID * F_IN + HID + HID * HID + HID + HID + 1)
    cost = pl.CostEstimate(
        flops=2 * B * (F_IN * HID + HID * HID + HID),
        transcendentals=0,
        bytes_accessed=B * (F_IN + 1) * 4 + weight_bytes,
    )

    out = pl.pallas_call(
        mlp_kernel,
        out_shape=jax.ShapeDtypeStruct((1, B), jnp.float32),
        grid=(n_tiles,),
        in_specs=[
            # Natural (tile_b, 13) input blocks, pipelined over the batch. Last block
            # may run past B; the unspecified rows only feed output columns that the
            # masked output store discards.
            # (On v5e a third input buffer via pipeline_mode=pl.Buffered(3) can hide
            #  the DMA tail; unnecessary on v6e/v7x, so left at the default here.)
            pl.BlockSpec((tile_b, F_IN), lambda i: (i, 0)),
            const(w1.shape),   # weights/biases resident in VMEM
            const(b1c.shape),
            const(w2.shape),
            const(b2c.shape),
            const(w3.shape),   # keep (1, 64) for the MXU head
            const(b3c.shape),
        ],
        out_specs=pl.BlockSpec((1, tile_b), lambda i: (0, i)),  # lane-dense output
        compiler_params=pltpu.CompilerParams(
            dimension_semantics=("parallel",),
            vmem_limit_bytes=vmem_limit,
        ),
        cost_estimate=cost,
    )(x, w1, b1c, w2, b2c, w3, b3c)

    return out.reshape(B, 1)


def init_params(key):
    # Deterministic init mirroring nn.Linear (PyTorch layout: weight (out,in), bias (out,)).
    ks = jax.random.split(key, 6)

    def uniform(k, shape, fan_in):
        bound = 1.0 / jnp.sqrt(fan_in)
        return jax.random.uniform(k, shape, jnp.float32, -bound, bound)

    w1 = uniform(ks[0], (HID, F_IN), float(F_IN))
    b1 = uniform(ks[1], (HID,), float(F_IN))
    w2 = uniform(ks[2], (HID, HID), float(HID))
    b2 = uniform(ks[3], (HID,), float(HID))
    w3 = uniform(ks[4], (1, HID), float(HID))
    b3 = uniform(ks[5], (1,), float(HID))
    return (w1, b1, w2, b2, w3, b3)


def reference_jax(x, params):
    w1, b1, w2, b2, w3, b3 = params
    h1 = jnp.maximum(x @ w1.T + b1, 0.0)
    h2 = jnp.maximum(h1 @ w2.T + b2, 0.0)
    return h2 @ w3.T + b3


if __name__ == "__main__":
    key = jax.random.PRNGKey(0)
    kx, kx2, kp = jax.random.split(key, 3)
    params = init_params(kp)

    # Small smoke test (single grid step, masked partial block).
    B1 = 8
    x1 = jax.random.normal(kx, (B1, F_IN), jnp.float32)
    out1 = jax.block_until_ready(reference_regression(x1, params))
    ref1 = reference_jax(x1, params)
    assert out1.shape == (B1, 1)
    assert jnp.allclose(out1, ref1, atol=1e-5, rtol=1e-5)

    # Multi-tile path (>= 2 grid steps, uneven last block).
    B2 = 300
    x2 = jax.random.normal(kx2, (B2, F_IN), jnp.float32)
    out2 = jax.block_until_ready(reference_regression(x2, params))
    ref2 = reference_jax(x2, params)
    assert out2.shape == (B2, 1)
    assert jnp.allclose(out2, ref2, atol=1e-5, rtol=1e-5)

    print("KERNEL_OK")
</pallas_src>

<mosaic_0001>
module attributes {stable_mosaic.version = 11 : i64} {
  func.func @mlp_kernel(%arg0: i32, %arg1: memref<128x13xf32, #tpu.memory_space<vmem>>, %arg2: memref<64x13xf32, #tpu.memory_space<vmem>>, %arg3: memref<64x1xf32, #tpu.memory_space<vmem>>, %arg4: memref<64x64xf32, #tpu.memory_space<vmem>>, %arg5: memref<64x1xf32, #tpu.memory_space<vmem>>, %arg6: memref<1x64xf32, #tpu.memory_space<vmem>>, %arg7: memref<1x1xf32, #tpu.memory_space<vmem>>, %arg8: memref<1x128xf32, #tpu.memory_space<vmem>>) attributes {dimension_semantics = [#tpu.dimension_semantics<parallel>], iteration_bounds = array<i64: 1>, scalar_prefetch = 0 : i64, scratch_operands = 0 : i64, tpu.core_type = #tpu.core_type<tc>, window_params = [{transform_indices = @transform_0, window_bounds = array<i64: 128, 13>}, {pipeline_mode = #tpu.pipeline_mode<synchronous>, transform_indices = @transform_1, window_bounds = array<i64: 64, 13>}, {pipeline_mode = #tpu.pipeline_mode<synchronous>, transform_indices = @transform_2, window_bounds = array<i64: 64, 1>}, {pipeline_mode = #tpu.pipeline_mode<synchronous>, transform_indices = @transform_3, window_bounds = array<i64: 64, 64>}, {pipeline_mode = #tpu.pipeline_mode<synchronous>, transform_indices = @transform_4, window_bounds = array<i64: 64, 1>}, {pipeline_mode = #tpu.pipeline_mode<synchronous>, transform_indices = @transform_5, window_bounds = array<i64: 1, 64>}, {pipeline_mode = #tpu.pipeline_mode<synchronous>, transform_indices = @transform_6, window_bounds = array<i64: 1, 1>}, {transform_indices = @transform_7, window_bounds = array<i64: 1, 128>}]} {
    %c0 = arith.constant 0 : index
    %c0_0 = arith.constant 0 : index
    %0 = vector.load %arg1[%c0, %c0_0] : memref<128x13xf32, #tpu.memory_space<vmem>>, vector<128x13xf32>
    %c0_1 = arith.constant 0 : index
    %c0_2 = arith.constant 0 : index
    %1 = vector.load %arg2[%c0_1, %c0_2] : memref<64x13xf32, #tpu.memory_space<vmem>>, vector<64x13xf32>
    %cst = arith.constant dense<0.000000e+00> : vector<64x128xf32>
    %2 = tpu.matmul %1, %0, %cst {dimension_numbers = #tpu.dot_dimension_numbers<[1], [1], [0], [0], [0, 0, 1, 0], [], []>} : vector<64x13xf32>, vector<128x13xf32>, vector<64x128xf32> -> vector<64x128xf32>
    %c0_3 = arith.constant 0 : index
    %c0_4 = arith.constant 0 : index
    %3 = vector.load %arg3[%c0_3, %c0_4] : memref<64x1xf32, #tpu.memory_space<vmem>>, vector<64x1xf32>
    %4 = vector.broadcast %3 : vector<64x1xf32> to vector<64x128xf32>
    %5 = arith.addf %2, %4 : vector<64x128xf32>
    %cst_5 = arith.constant 0.000000e+00 : f32
    %6 = vector.broadcast %cst_5 : f32 to vector<64x128xf32>
    %7 = arith.maximumf %5, %6 : vector<64x128xf32>
    %c0_6 = arith.constant 0 : index
    %c0_7 = arith.constant 0 : index
    %8 = vector.load %arg4[%c0_6, %c0_7] : memref<64x64xf32, #tpu.memory_space<vmem>>, vector<64x64xf32>
    %cst_8 = arith.constant dense<0.000000e+00> : vector<64x128xf32>
    %9 = tpu.matmul %8, %7, %cst_8 {dimension_numbers = #tpu.dot_dimension_numbers<[1], [0], [0], [1], [0, 0, 1, 1], [], []>} : vector<64x64xf32>, vector<64x128xf32>, vector<64x128xf32> -> vector<64x128xf32>
    %c0_9 = arith.constant 0 : index
    %c0_10 = arith.constant 0 : index
    %10 = vector.load %arg5[%c0_9, %c0_10] : memref<64x1xf32, #tpu.memory_space<vmem>>, vector<64x1xf32>
    %11 = vector.broadcast %10 : vector<64x1xf32> to vector<64x128xf32>
    %12 = arith.addf %9, %11 : vector<64x128xf32>
    %cst_11 = arith.constant 0.000000e+00 : f32
    %13 = vector.broadcast %cst_11 : f32 to vector<64x128xf32>
    %14 = arith.maximumf %12, %13 : vector<64x128xf32>
    %c0_12 = arith.constant 0 : index
    %c0_13 = arith.constant 0 : index
    %15 = vector.load %arg6[%c0_12, %c0_13] : memref<1x64xf32, #tpu.memory_space<vmem>>, vector<1x64xf32>
    %cst_14 = arith.constant dense<0.000000e+00> : vector<1x128xf32>
    %16 = tpu.matmul %15, %14, %cst_14 {dimension_numbers = #tpu.dot_dimension_numbers<[1], [0], [0], [1], [0, 0, 1, 1], [], []>} : vector<1x64xf32>, vector<64x128xf32>, vector<1x128xf32> -> vector<1x128xf32>
    %c0_15 = arith.constant 0 : index
    %c0_16 = arith.constant 0 : index
    %17 = vector.load %arg7[%c0_15, %c0_16] : memref<1x1xf32, #tpu.memory_space<vmem>>, vector<1x1xf32>
    %18 = vector.broadcast %17 : vector<1x1xf32> to vector<1x128xf32>
    %19 = arith.addf %16, %18 : vector<1x128xf32>
    %c0_17 = arith.constant 0 : index
    %c0_18 = arith.constant 0 : index
    %20 = vector.load %arg8[%c0_17, %c0_18] : memref<1x128xf32, #tpu.memory_space<vmem>>, vector<1x128xf32>
    tpu.vector_store %arg8[%c0_17, %c0_18], %19 {strides = array<i32>} : memref<1x128xf32, #tpu.memory_space<vmem>>, vector<1x128xf32>,
    return
  }
  func.func @transform_0(%arg0: i32) -> (i32, i32) {
    %c0_i32 = arith.constant 0 : i32
    %c0_i32_0 = arith.constant 0 : i32
    return %arg0, %c0_i32 : i32, i32
  }
  func.func @transform_1(%arg0: i32) -> (i32, i32) {
    %c0_i32 = arith.constant 0 : i32
    %c0_i32_0 = arith.constant 0 : i32
    %c0_i32_1 = arith.constant 0 : i32
    return %c0_i32, %c0_i32_0 : i32, i32
  }
  func.func @transform_2(%arg0: i32) -> (i32, i32) {
    %c0_i32 = arith.constant 0 : i32
    %c0_i32_0 = arith.constant 0 : i32
    %c0_i32_1 = arith.constant 0 : i32
    return %c0_i32, %c0_i32_0 : i32, i32
  }
  func.func @transform_3(%arg0: i32) -> (i32, i32) {
    %c0_i32 = arith.constant 0 : i32
    %c0_i32_0 = arith.constant 0 : i32
    %c0_i32_1 = arith.constant 0 : i32
    return %c0_i32, %c0_i32_0 : i32, i32
  }
  func.func @transform_4(%arg0: i32) -> (i32, i32) {
    %c0_i32 = arith.constant 0 : i32
    %c0_i32_0 = arith.constant 0 : i32
    %c0_i32_1 = arith.constant 0 : i32
    return %c0_i32, %c0_i32_0 : i32, i32
  }
  func.func @transform_5(%arg0: i32) -> (i32, i32) {
    %c0_i32 = arith.constant 0 : i32
    %c0_i32_0 = arith.constant 0 : i32
    %c0_i32_1 = arith.constant 0 : i32
    return %c0_i32, %c0_i32_0 : i32, i32
  }
  func.func @transform_6(%arg0: i32) -> (i32, i32) {
    %c0_i32 = arith.constant 0 : i32
    %c0_i32_0 = arith.constant 0 : i32
    %c0_i32_1 = arith.constant 0 : i32
    return %c0_i32, %c0_i32_0 : i32, i32
  }
  func.func @transform_7(%arg0: i32) -> (i32, i32) {
    %c0_i32 = arith.constant 0 : i32
    %c0_i32_0 = arith.constant 0 : i32
    return %c0_i32, %arg0 : i32, i32
  }
}

</mosaic_0001>

<bundles_post_ra>
// kernel: reference_regression.1
= control target key start
LH: loop header
LB: loop body
LE: loop exit
PB: predicated region body
PF: predicated region fallthrough
CT: control target
= control target key end

     0   :  { %s1122_s0 = inlined_call_operand.vmem [shape: f32[8,13], index: 0, kind: input, shape index: {}]   ;;  %s1123_s1 = inlined_call_operand.vmem [shape: f32[64,13], index: 1, kind: input, shape index: {}]   ;;  %s1124_s2 = inlined_call_operand.vmem [shape: f32[64,1], index: 2, kind: input, shape index: {}]   ;;  %s1125_s3 = inlined_call_operand.vmem [shape: f32[64,64], index: 3, kind: input, shape index: {}]   ;;  %s1126_s4 = inlined_call_operand.vmem [shape: f32[64,1], index: 4, kind: input, shape index: {}]   ;;  %s1127_s5 = inlined_call_operand.vmem [shape: f32[1,64], index: 5, kind: input, shape index: {}]   ;;  %s1128_s6 = inlined_call_operand.<no memory space> [shape: f32[1,1], index: 6, kind: input, shape index: {}]   ;;  %s1129_s7 = inlined_call_operand.hbm [shape: f32[1,8], index: 7, kind: output, shape index: {}]  }
   0x1   :  { %v12_v0 = vstv %s1128_s6 }
   0x2   :  { %13 = vst [vmem:[#allocation2] sm:$0x1] %v12_v0 }
   0x3   :  { %v29_v1 = vld [vmem:[%s1122_s0] sm:$0xff]  ;;  %v30_v2 = vld [vmem:[%s1122_s0 + $0x8] sm:$0xff]  ;;  %vm101_vm0 = vcmask 105472   ;;  %v31_v3 = vld [vmem:[%s1122_s0 + $0x10] sm:$0xff]  ;;  %v860_v7 = vmov 0  }
   0x4   :  { %v753_v4 = vpack.c.bf16 %v30_v2, %v29_v1  ;;  %vm919_vm1 = vmpackc.low %vm101_vm0, %vm101_vm0  ;;  %v32_v6 = vld [vmem:[%s1122_s0 + $0x18] sm:$0xff]  ;;  %834 = vset.pattern.permute.xlu0 %v860_v7  ;;  %835 = vset.pattern.permute.xlu1 %v860_v7  ;;  %v45_v9 = vld [vmem:[%s1123_s1] sm:$0xff] }
   0x5   :  { %v759_v8 = vpack.c.bf16 %v32_v6, %v31_v3  ;;  %v33_v10 = vld [vmem:[%s1122_s0 + $0x20] sm:$0xff]  ;;  %v34_v11 = vld [vmem:[%s1122_s0 + $0x28] sm:$0xff]  ;;  %694 = vmatprep.mubr.msk.f32.mxu0 %vm101_vm0, %v45_v9  ;;  %v55_v14 = vld [vmem:[%s1124_s2 + $0x10] sm:$0xff] }
   0x6   :  { %755 = vmatprep.subr.msk.bf16.mxu0 %vm919_vm1, %v753_v4  ;;  %v53_v12 = vld [vmem:[%s1124_s2] sm:$0xff]  ;;  %v765_v13 = vpack.c.bf16 %v34_v11, %v33_v10  ;;  %v54_v15 = vld [vmem:[%s1124_s2 + $0x8] sm:$0xff]  ;;  %73 = vperm.xlu1 %835, %v55_v14   ;;  %v56_v16 = vld [vmem:[%s1124_s2 + $0x18] sm:$0xff] }
   0x7   :  { %758 = vmatpush3.bf16.xpose.msk.msra.mxu0 %vm919_vm1, %v753_v4  ;;  %63 = vperm.xlu0 %834, %v53_v12   ;;  %v35_v17 = vld [vmem:[%s1122_s0 + $0x30] sm:$0xff]  ;;  %v36_v18 = vld [vmem:[%s1122_s0 + $0x38] sm:$0xff]  ;;  %v57_v19 = vld [vmem:[%s1124_s2 + $0x20] sm:$0xff] }
   0x8   :  { %761 = vmatprep.subr.msk.bf16.mxu0 %vm919_vm1, %v759_v8 }
   0xa   :  { %78 = vperm.xlu1 %835, %v56_v16  }
   0xb   :  { %68 = vperm.xlu0 %834, %v54_v15  }
   0xf   :  { %764 = vmatpush3.bf16.xpose.msk.msra.mxu0 %vm919_vm1, %v759_v8 }
  0x10   :  { %767 = vmatprep.subr.msk.bf16.mxu0 %vm919_vm1, %v765_v13 }
  0x11   :  { %14 = vsyncpa [#allocation4], 0  ;;  %v58_v20 = vld [vmem:[%s1124_s2 + $0x28] sm:$0xff]  ;;  %v771_v21 = vpack.c.bf16 %v36_v18, %v35_v17  ;;  %83 = vperm.xlu0 %834, %v57_v19   ;;  %v59_v22 = vld [vmem:[%s1124_s2 + $0x30] sm:$0xff]  ;;  %vm343_vm2 = vcmask 523264   ;;  %vm862_vm3 = vmmov 0  }
  0x12   :  { %88 = vperm.xlu1 %835, %v58_v20   ;;  %v60_v23 = vld [vmem:[%s1124_s2 + $0x38] sm:$0xff]  ;;  %v37_v24 = vld [vmem:[%s1122_s0 + $0x40] sm:$0xff]  ;;  %v38_v25 = vld [vmem:[%s1122_s0 + $0x48] sm:$0xff]  ;;  %s864_s20 = smov [#allocation3]  }
  0x13   :  { %v295_v26 = vld [vmem:[%s1126_s4] sm:$0xff]  ;;  %v296_v27 = vld [vmem:[%s1126_s4 + $0x8] sm:$0xff]  ;;  %v777_v28 = vpack.c.bf16 %v38_v25, %v37_v24  ;;  %v297_v29 = vld [vmem:[%s1126_s4 + $0x10] sm:$0xff] }
  0x14   :  { %v298_v30 = vld [vmem:[%s1126_s4 + $0x18] sm:$0xff]  ;;  %v39_v31 = vld [vmem:[%s1122_s0 + $0x50] sm:$0xff]  ;;  %v299_v33 = vld [vmem:[%s1126_s4 + $0x20] sm:$0xff] }
  0x15   :  { %93 = vperm.xlu0 %834, %v59_v22   ;;  %v40_v32 = vld [vmem:[%s1122_s0 + $0x58] sm:$0xff]  ;;  %v300_v34 = vld [vmem:[%s1126_s4 + $0x28] sm:$0xff]  ;;  %v301_v36 = vld [vmem:[%s1126_s4 + $0x30] sm:$0xff] }
  0x16   :  { %98 = vperm.xlu1 %835, %v60_v23   ;;  %v783_v35 = vpack.c.bf16 %v40_v32, %v39_v31  ;;  %v302_v37 = vld [vmem:[%s1126_s4 + $0x38] sm:$0xff]  ;;  %v41_v38 = vld [vmem:[%s1122_s0 + $0x60] sm:$0xff]  ;;  %v42_v39 = vld [vmem:[%s1122_s0 + $0x68] sm:$0xff]  ;;  %v861_v32 = vmov 0.0|0.0  }
  0x17   :  { %770 = vmatpush3.bf16.xpose.msk.msra.mxu0 %vm919_vm1, %v765_v13  ;;  %v482_v40 = vld [vmem:[#allocation2] sm:$0x1]  ;;  %v789_v41 = vpack.c.bf16 %v42_v39, %v41_v38  ;;  %v43_v42 = vld [vmem:[%s1122_s0 + $0x70] sm:$0xff]  ;;  %v44_v43 = vld [vmem:[%s1122_s0 + $0x78] sm:$0xff]  ;;  %s572_s0 = sshll.u32 %s864_s20, 4  ;;  %s573_s0 = int_to_ptr.vmem [resolvable:$true] %s572_s0 }
  0x18   :  { %773 = vmatprep.subr.msk.bf16.mxu0 %vm919_vm1, %v771_v21  ;;  %v795_v44 = vpack.c.bf16 %v44_v43, %v43_v42  ;;  %v46_v45 = vld [vmem:[%s1123_s1 + $0x8] sm:$0xff]  ;;  %v47_v46 = vld [vmem:[%s1123_s1 + $0x10] sm:$0xff]  ;;  %v48_v47 = vld [vmem:[%s1123_s1 + $0x18] sm:$0xff]  ;;  %s836_s21 = scalar_lea.vmem %s573_s0, 16  ;;  %s840_s22 = scalar_lea.vmem %s573_s0, 32 }
  0x19   :  { %305 = vperm.xlu0 %834, %v295_v26   ;;  %v49_v48 = vld [vmem:[%s1123_s1 + $0x20] sm:$0xff]  ;;  %v50_v49 = vld [vmem:[%s1123_s1 + $0x28] sm:$0xff]  ;;  %v51_v50 = vld [vmem:[%s1123_s1 + $0x30] sm:$0xff]  ;;  %p837_p0 = scmp.ne.s32.totalorder %s573_s0, %s836_s21  ;;  %p841_p1 = scmp.lt.s32.totalorder %s573_s0, %s573_s0 }
  0x1a   :  { %310 = vperm.xlu1 %835, %v296_v27   ;;  %v52_v51 = vld [vmem:[%s1123_s1 + $0x38] sm:$0xff]  ;;  %v287_v52 = vld [vmem:[%s1125_s3] sm:$0xff]  ;;  %v288_v25 = vld [vmem:[%s1125_s3 + $0x8] sm:$0xff]  ;;  %p842_p2 = scmp.lt.s32.totalorder %s840_s22, %s836_s21 }
  0x1b   :  { %722 = vmatprep.mubr.msk.f32.mxu1 %vm343_vm2, %v287_v52  ;;  %v289_v26 = vld [vmem:[%s1125_s3 + $0x10] sm:$0xff]  ;;  %v290_v27 = vld [vmem:[%s1125_s3 + $0x18] sm:$0xff] }
  0x1c   :  { %v294_v31 = vld [vmem:[%s1125_s3 + $0x38] sm:$0xff]  ;;  %p843_p3 = por %p842_p2, %p841_p1 }
  0x1d   :  { %315 = vperm.xlu0 %834, %v297_v29   ;;  %v292_v29 = vld [vmem:[%s1125_s3 + $0x28] sm:$0xff] }
  0x1e   :  { %320 = vperm.xlu1 %835, %v298_v30   ;;  %v293_v30 = vld [vmem:[%s1125_s3 + $0x30] sm:$0xff]  ;;  %p844_p4 = pnand %p843_p3, %p837_p0 }
  0x1f   :  { %776 = vmatpush3.bf16.xpose.msk.msra.mxu0 %vm919_vm1, %v771_v21 }
  0x20   :  { %779 = vmatprep.subr.msk.bf16.mxu0 %vm919_vm1, %v777_v28 }
  0x21   :  { %325 = vperm.xlu0 %834, %v299_v33   ;;  %v863_v33 = vmov 0.0  }
  0x22   :  { %330 = vperm.xlu1 %835, %v300_v34  }
  0x25   :  { %335 = vperm.xlu0 %834, %v301_v36  }
  0x26   :  { %340 = vperm.xlu1 %835, %v302_v37  }
  0x27   :  { %782 = vmatpush3.bf16.xpose.msk.msra.mxu0 %vm919_vm1, %v777_v28  ;;  %v291_v28 = vld [vmem:[%s1125_s3 + $0x20] sm:$0xff] }
  0x28   :  { %785 = vmatprep.subr.msk.bf16.mxu0 %vm919_vm1, %v783_v35 }
  0x29   :  { %485 = vperm.xlu0 %834, %v482_v40  }
  0x2f   :  { %788 = vmatpush3.bf16.xpose.msk.msra.mxu0 %vm919_vm1, %v783_v35 }
  0x30   :  { %791 = vmatprep.subr.msk.bf16.mxu0 %vm919_vm1, %v789_v41 }
  0x37   :  { %794 = vmatpush3.bf16.xpose.msk.msra.mxu0 %vm919_vm1, %v789_v41 }
  0x38   :  { %797 = vmatprep.subr.msk.bf16.mxu0 %vm919_vm1, %v795_v44 }
  0x3f   :  { %800 = vmatpush3.bf16.xpose.msk.msra.mxu0 %vm919_vm1, %v795_v44 }
  0x46   :  { %695 = vmatmul.mubr.msk.f32.vlgmr.msra.gmra.mrb[0].mxu0 %vm101_vm0, %v46_v45 }
  0x47   :  { %697 = vmatprep.mubr.msk.f32.mxu0 %vm101_vm0, %v47_v46 }
  0x4a   :  { %698 = vmatmul.mubr.msk.f32.gmra.mrb[2].mxu0 %vm101_vm0, %v48_v47 }
  0x4b   :  { %700 = vmatprep.mubr.msk.f32.mxu0 %vm101_vm0, %v49_v48 }
  0x4e   :  { %701 = vmatmul.mubr.msk.f32.gmra.mrb[4].mxu0 %vm101_vm0, %v50_v49 }
  0x4f   :  { %703 = vmatprep.mubr.msk.f32.mxu0 %vm101_vm0, %v51_v50 }
  0x52   :  { %704 = vmatmul.mubr.msk.f32.gmra.mrb[6].mxu0 %vm101_vm0, %v52_v51 }
  0x85   :  { %v74_v54 = vpop.permute.xlu1 %73 }
  0x86   :  { %v64_v53 = vpop.permute.xlu0 %63 }
  0x89   :  { %v79_v56 = vpop.permute.xlu1 %78 }
  0x8a   :  { %v69_v55 = vpop.permute.xlu0 %68 }
  0x90   :  { %v84_v5 = vpop.permute.xlu0 %83 }
  0x91   :  { %v89_v2 = vpop.permute.xlu1 %88 }
  0x94   :  { %v94_v17 = vpop.permute.xlu0 %93 }
  0x95   :  { %v99_v14 = vpop.permute.xlu1 %98 }
  0x98   :  { %v306_v35 = vpop.permute.xlu0 %305 }
  0x99   :  { %v311_v34 = vpop.permute.xlu1 %310 }
  0x9c   :  { %v316_v38 = vpop.permute.xlu0 %315 }
  0x9d   :  { %v321_v36 = vpop.permute.xlu1 %320 }
  0xa0   :  { %v326_v50 = vpop.permute.xlu0 %325 }
  0xa1   :  { %v331_v47 = vpop.permute.xlu1 %330 }
 0x119   :  { %v696_v57 = vpop.f32.mrb[0].mxu0 }
 0x11a   :  { %v246_v58 = vadd.f32 %v696_v57, %v69_v55  ;;  %v240_v59 = vpop.f32.mrb[1].mxu0 }
 0x11b   :  { %v241_v60 = vadd.f32 %v240_v59, %v64_v53  ;;  %v341_v59 = vpop.permute.xlu1 %340 }
 0x11c   :  { %v280_v61 = vmax.f32 %v246_v58, 0.0 }
 0x11d   :  { %v279_v62 = vmax.f32 %v241_v60, 0.0  ;;  %v699_v63 = vpop.f32.mrb[2].mxu0 }
 0x11e   :  { %v256_v0 = vadd.f32 %v699_v63, %v79_v56  ;;  %v250_v1 = vpop.f32.mrb[3].mxu0 }
 0x11f   :  { %v251_v3 = vadd.f32 %v250_v1, %v74_v54  ;;  %v801_v4 = vpack.c.bf16 %v280_v61, %v279_v62  ;;  %v336_v62 = vpop.permute.xlu0 %335 }
 0x120   :  { %v282_v6 = vmax.f32 %v256_v0, 0.0 }
 0x121   :  { %v281_v7 = vmax.f32 %v251_v3, 0.0  ;;  %v702_v8 = vpop.f32.mrb[4].mxu0  ;;  %802 = vmatprep.subr.bf16.mxu1 %v801_v4 }
 0x122   :  { %v266_v9 = vadd.f32 %v702_v8, %v89_v2  ;;  %v260_v10 = vpop.f32.mrb[5].mxu0  ;;  %804 = vmatpush3.bf16.msra.mxu1 %v801_v4 }
 0x123   :  { %v805_v11 = vpack.c.bf16 %v282_v6, %v281_v7  ;;  %v261_v12 = vadd.f32 %v260_v10, %v84_v5  ;;  %v481_v6 = vld [vmem:[%s1127_s5] sm:$0x1]  ;;  %v488_v7 = vlaneseq  ;;  %v486_v10 = vpop.permute.xlu0 %485 }
 0x124   :  { %v284_v13 = vmax.f32 %v266_v9, 0.0 }
 0x125   :  { %v283_v15 = vmax.f32 %v261_v12, 0.0  ;;  %v705_v16 = vpop.f32.mrb[6].mxu0  ;;  %806 = vmatprep.subr.bf16.mxu1 %v805_v11  ;;  %v489_v8 = vshrl.u32 %v488_v7, 7 }
 0x126   :  { %v276_v18 = vadd.f32 %v705_v16, %v99_v14  ;;  %v270_v19 = vpop.f32.mrb[7].mxu0  ;;  %808 = vmatpush3.bf16.msra.mxu1 %v805_v11 }
 0x127   :  { %v809_v20 = vpack.c.bf16 %v284_v13, %v283_v15  ;;  %v271_v21 = vadd.f32 %v270_v19, %v94_v17  ;;  %v490_v9 = vsub.s32 0, %v489_v8 }
 0x128   :  { %v286_v22 = vmax.f32 %v276_v18, 0.0 }
 0x129   :  { %v285_v23 = vmax.f32 %v271_v21, 0.0  ;;  %810 = vmatprep.subr.bf16.mxu1 %v809_v20  ;;  %v491_v11 = vrot.slane %v486_v10, %v490_v9 }
 0x12a   :  { %812 = vmatpush3.bf16.msra.mxu1 %v809_v20 }
 0x12b   :  { %v813_v24 = vpack.c.bf16 %v286_v22, %v285_v23 }
 0x12d   :  { %814 = vmatprep.subr.bf16.mxu1 %v813_v24 }
 0x12e   :  { %816 = vmatpush3.bf16.msra.mxu1 %v813_v24 }
 0x12f   :  { %817 = vmatprep.subr.bf16.mxu1 %v861_v32 }
 0x131   :  { %723 = vmatmul.mubr.msk.f32.vlgmr.msra.gmra.mrb[0].mxu1 %vm343_vm2, %v288_v25 }
 0x132   :  { %725 = vmatprep.mubr.msk.f32.mxu1 %vm343_vm2, %v289_v26 }
 0x135   :  { %726 = vmatmul.mubr.msk.f32.gmra.mrb[2].mxu1 %vm343_vm2, %v290_v27 }
 0x136   :  { %728 = vmatprep.mubr.msk.f32.mxu1 %vm343_vm2, %v291_v28 }
 0x139   :  { %729 = vmatmul.mubr.msk.f32.gmra.mrb[4].mxu1 %vm343_vm2, %v292_v29 }
 0x13a   :  { %731 = vmatprep.mubr.msk.f32.mxu1 %vm343_vm2, %v293_v30 }
 0x13d   :  { %732 = vmatmul.mubr.msk.f32.gmra.mrb[6].mxu1 %vm343_vm2, %v294_v31 }
 0x13e   :  { %750 = vmatprep.mubr.msk.f32.mxu1 %vm862_vm3, %v863_v33 }
 0x204   :  { %v724_v37 = vpop.f32.mrb[0].mxu1 }
 0x205   :  { %v440_v39 = vadd.f32 %v724_v37, %v311_v34  ;;  %v434_v40 = vpop.f32.mrb[1].mxu1 }
 0x206   :  { %v435_v41 = vadd.f32 %v434_v40, %v306_v35 }
 0x207   :  { %v474_v42 = vmax.f32 %v440_v39, 0.0 }
 0x208   :  { %v473_v43 = vmax.f32 %v435_v41, 0.0  ;;  %v727_v44 = vpop.f32.mrb[2].mxu1 }
 0x209   :  { %v450_v45 = vadd.f32 %v727_v44, %v321_v36  ;;  %v444_v46 = vpop.f32.mrb[3].mxu1 }
 0x20a   :  { %v818_v48 = vpack.c.bf16 %v474_v42, %v473_v43  ;;  %v445_v49 = vadd.f32 %v444_v46, %v316_v38 }
 0x20b   :  { %v476_v51 = vmax.f32 %v450_v45, 0.0 }
 0x20c   :  { %v475_v52 = vmax.f32 %v445_v49, 0.0  ;;  %v730_v53 = vpop.f32.mrb[4].mxu1  ;;  %819 = vmatpush3.bf16.msra.mxu1 %v818_v48 }
 0x20d   :  { %v460_v54 = vadd.f32 %v730_v53, %v331_v47  ;;  %v454_v55 = vpop.f32.mrb[5].mxu1  ;;  %820 = vmatprep.subr.bf16.mxu1 %v861_v32 }
 0x20e   :  { %v821_v56 = vpack.c.bf16 %v476_v51, %v475_v52  ;;  %v455_v57 = vadd.f32 %v454_v55, %v326_v50 }
 0x20f   :  { %v478_v58 = vmax.f32 %v460_v54, 0.0 }
 0x210   :  { %v477_v60 = vmax.f32 %v455_v57, 0.0  ;;  %v733_v61 = vpop.f32.mrb[6].mxu1  ;;  %822 = vmatpush3.bf16.msra.mxu1 %v821_v56 }
 0x211   :  { %v470_v63 = vadd.f32 %v733_v61, %v341_v59  ;;  %v464_v0 = vpop.f32.mrb[7].mxu1  ;;  %823 = vmatprep.subr.bf16.mxu1 %v861_v32 }
 0x212   :  { %v824_v1 = vpack.c.bf16 %v478_v58, %v477_v60  ;;  %v465_v2 = vadd.f32 %v464_v0, %v336_v62 }
 0x213   :  { %v480_v3 = vmax.f32 %v470_v63, 0.0 }
 0x214   :  { %v479_v4 = vmax.f32 %v465_v2, 0.0  ;;  %825 = vmatpush3.bf16.msra.mxu1 %v824_v1 }
 0x215   :  { %826 = vmatprep.subr.bf16.mxu1 %v861_v32 }
 0x216   :  { %v827_v5 = vpack.c.bf16 %v480_v3, %v479_v4 }
 0x218   :  { %828 = vmatpush3.bf16.msra.mxu1 %v827_v5 }
 0x21b   :  { %751 = vmatmul.mubr.msk.f32.vlgmr.msra.gmra.mrb[8].mxu1 %vm343_vm2, %v481_v6 }
 0x2ee   :  { %v561_v12 = vpop.f32.mrb[8].mxu1 }
 0x2ef   :  { %v562_v13 = vadd.f32 %v561_v12, %v491_v11  ;;  %v752_v14 = vpop.f32.mrb[9].mxu1 }
 0x2f1   :  { %565 = vst [vmem:[#allocation3] sm:$0x1] %v562_v13 }
 0x2f2   :  { %847 = shalt.err (!%p844_p4)
}
 0x2f3   :  { %s848_s24 = scalar_lea.hbm %s1129_s7, 16 }
 0x2f4   :  { %p849_p5 = scmp.ne.s32.totalorder %s1129_s7, %s848_s24  ;;  %p852_p6 = scmp.lt.u32.totalorder %s848_s24, %s1129_s7 }
 0x2f6   :  { %p854_p7 = pnand %p852_p6, %p849_p5 }
 0x2f8   :  { %857 = shalt.err (!%p854_p7)
}
 0x2f9   :  { %575 = dma.vmem_to_hbm [thread:$0]  %s573_s0, 16, %s1129_s7, [#allocation4]  }
 0x2fa   :  { %858 = dma.done.wait [#allocation4], 16  }
 0x2fb   :  { %859 = vsyncadd [#allocation4], 4294967280 }
 0x2fc   :  { %579 = vsyncpa [#allocation4], 1 }

</bundles_post_ra>
